<compile_context>
chip_gen: v6e
topology: v6e:2x2x1
jax: 0.10.0
libtpu: 0.0.40
codegen_flags: <defaults>
</compile_context>

<pallas_src>
import jax
import jax.numpy as jnp
from jax.experimental import pallas as pl
from jax.experimental.pallas import tpu as pltpu


LANE = 128            # vreg lane width; output last dim stays lane-dense
MAX_BLOCK_ROWS = 4096  # 4096 x 128 f32 = 2 MiB/block; ~8 MiB double-buffered
                       # in+out -> safe under every chip's default scoped VMEM.


# ----------------------------------------------------------------------------
# Kernel: out = sigmoid((tanh(alpha*0.1) - x) * 10) = 0.5 + 0.5*tanh(s - 5*x)
# with s = 5*tanh(0.1*alpha) precomputed as an SMEM scalar.
# ----------------------------------------------------------------------------
def _condition_kernel(s_ref, x_ref, o_ref):
    x = x_ref[...].astype(jnp.float32)               # (block_rows, 128)
    z = s_ref[0] - jnp.float32(5.0) * x              # scalar splat + VPU fma
    y = jnp.float32(0.5) + jnp.float32(0.5) * jnp.tanh(z)   # single EUP push
    o_ref[...] = y.astype(o_ref.dtype)


def _sublane(dtype):
    # Minimal second-to-last block granularity: f32 -> 8, bf16 -> 16, 8-bit -> 32.
    itemsize = jnp.dtype(dtype).itemsize
    return 8 * max(1, 4 // itemsize)


# ----------------------------------------------------------------------------
# Wrapper: view as lane-dense 2D, tile rows with a cdiv grid, launch.
# ----------------------------------------------------------------------------
def condition_forward(x, alpha):
    orig_shape = x.shape
    dtype = x.dtype
    n = x.size
    sub = _sublane(dtype)

    xf = x.reshape(-1)
    ragged = (n % LANE) != 0
    if ragged:
        # Rare path: pad only to the next LANE multiple (one small copy).
        xf = jnp.pad(xf, (0, LANE - (n % LANE)))
    rows = xf.size // LANE
    x2d = xf.reshape(rows, LANE)

    # Big blocks to amortize per-step pipeline overhead, clamped so there are
    # >= 2 grid blocks (v7x megacore split) and sublane-aligned for the dtype.
    half = pl.cdiv(rows, 2)
    block_rows = min(MAX_BLOCK_ROWS, ((half + sub - 1) // sub) * sub)
    block_rows = max(block_rows, sub)
    if block_rows >= rows:
        block_rows = rows          # single full-extent block (any row count OK)
    grid = (pl.cdiv(rows, block_rows),)

    # Precompute the scalar s = 5 * tanh(0.1 * alpha) outside the kernel.
    s = (jnp.float32(5.0)
         * jnp.tanh(jnp.asarray(alpha, jnp.float32) * jnp.float32(0.1))
         ).reshape(1)

    out = pl.pallas_call(
        _condition_kernel,
        out_shape=jax.ShapeDtypeStruct((rows, LANE), dtype),
        grid=grid,
        in_specs=[
            pl.BlockSpec(memory_space=pltpu.MemorySpace.SMEM),     # scalar s
            pl.BlockSpec((block_rows, LANE), lambda i: (i, 0)),    # x tile
        ],
        out_specs=pl.BlockSpec((block_rows, LANE), lambda i: (i, 0)),
        compiler_params=pltpu.CompilerParams(
            dimension_semantics=("parallel",)),                    # 2 TCs on v7x
    )(s, x2d)

    out = out.reshape(-1)
    if ragged:
        out = out[:n]
    return out.reshape(orig_shape)


if __name__ == "__main__":
    # Module parameter: alpha = 10.0 (nn.Parameter(torch.FloatTensor([10.0]))).
    alpha = jnp.float32(10.0)

    # Deterministic small input.
    x = jax.random.normal(jax.random.PRNGKey(0), (2, 4, 16, 16), jnp.float32)

    y = condition_forward(x, alpha)
    y = jax.block_until_ready(y)

    # Pure-JAX reference of the PyTorch forward.
    ref = jax.nn.sigmoid((jnp.tanh(alpha * 0.1) - x) * 10.0)

    assert y.shape == x.shape, y.shape
    assert bool(jnp.all(jnp.isfinite(y)))
    assert bool(jnp.allclose(y, ref, atol=1e-5, rtol=1e-5)), float(
        jnp.max(jnp.abs(y - ref)))

    print("KERNEL_OK")
</pallas_src>

<mosaic_0001>
module attributes {stable_mosaic.version = 11 : i64} {
  func.func @_condition_kernel(%arg0: i32, %arg1: memref<1xf32, #tpu.memory_space<smem>>, %arg2: memref<8x128xf32, #tpu.memory_space<vmem>>, %arg3: memref<8x128xf32, #tpu.memory_space<vmem>>) attributes {dimension_semantics = [#tpu.dimension_semantics<parallel>], iteration_bounds = array<i64: 2>, scalar_prefetch = 0 : i64, scratch_operands = 0 : i64, tpu.core_type = #tpu.core_type<tc>, window_params = [{transform_indices = @transform_0, window_bounds = array<i64: 1>}, {transform_indices = @transform_1, window_bounds = array<i64: 8, 128>}, {transform_indices = @transform_2, window_bounds = array<i64: 8, 128>}]} {
    %c0 = arith.constant 0 : index
    %c0_0 = arith.constant 0 : index
    %0 = vector.load %arg2[%c0, %c0_0] : memref<8x128xf32, #tpu.memory_space<vmem>>, vector<8x128xf32>
    %c0_1 = arith.constant 0 : index
    %1 = memref.load %arg1[%c0_1] : memref<1xf32, #tpu.memory_space<smem>>
    %cst = arith.constant 5.000000e+00 : f32
    %2 = vector.broadcast %cst : f32 to vector<8x128xf32>
    %3 = arith.mulf %2, %0 : vector<8x128xf32>
    %4 = vector.broadcast %1 : f32 to vector<8x128xf32>
    %5 = arith.subf %4, %3 : vector<8x128xf32>
    %6 = math.tanh %5 : vector<8x128xf32>
    %cst_2 = arith.constant 5.000000e-01 : f32
    %7 = vector.broadcast %cst_2 : f32 to vector<8x128xf32>
    %8 = arith.mulf %7, %6 : vector<8x128xf32>
    %cst_3 = arith.constant 5.000000e-01 : f32
    %9 = vector.broadcast %cst_3 : f32 to vector<8x128xf32>
    %10 = arith.addf %9, %8 : vector<8x128xf32>
    %c0_4 = arith.constant 0 : index
    %c0_5 = arith.constant 0 : index
    %11 = vector.load %arg3[%c0_4, %c0_5] : memref<8x128xf32, #tpu.memory_space<vmem>>, vector<8x128xf32>
    tpu.vector_store %arg3[%c0_4, %c0_5], %10 {strides = array<i32>} : memref<8x128xf32, #tpu.memory_space<vmem>>, vector<8x128xf32>,
    return
  }
  func.func @transform_0(%arg0: i32) -> i32 {
    %c0_i32 = arith.constant 0 : i32
    %c0_i32_0 = arith.constant 0 : i32
    return %c0_i32 : i32
  }
  func.func @transform_1(%arg0: i32) -> (i32, i32) {
    %c0_i32 = arith.constant 0 : i32
    %c0_i32_0 = arith.constant 0 : i32
    return %arg0, %c0_i32 : i32, i32
  }
  func.func @transform_2(%arg0: i32) -> (i32, i32) {
    %c0_i32 = arith.constant 0 : i32
    %c0_i32_0 = arith.constant 0 : i32
    return %arg0, %c0_i32 : i32, i32
  }
}

</mosaic_0001>

<bundles_post_ra>
// kernel: tpu_custom_call.1
= control target key start
LH: loop header
LB: loop body
LE: loop exit
PB: predicated region body
PF: predicated region fallthrough
CT: control target
= control target key end

     0   :  { %s568_s0 = inlined_call_operand.<no memory space> [shape: f32[1], index: 0, kind: input, shape index: {}]   ;;  %s569_s1 = inlined_call_operand.hbm [shape: f32[16,128], index: 1, kind: input, shape index: {}]   ;;  %s570_s2 = inlined_call_operand.hbm [shape: f32[16,128], index: 2, kind: output, shape index: {}]  }
   0x1   :  { %7 = sst [smem:[#allocation2]] %s568_s0 }
   0x2   :  { %8 = vsyncpa [#allocation4], 0 }
   0x3   :  { %10 = vsyncpa [#allocation4 + $0x1], 0 }
   0x4   :  { %11 = vsyncpa [#allocation5], 0 }
   0x5   :  { %13 = vsyncpa [#allocation5 + $0x1], 0  ;;  %s427_s11 = smov 0   ;;  %s429_s12 = smov 0  }
   0x6   :  { %s431_s13 = smov 0   ;;  %s433_s14 = smov 0  }
   0x7 LB: > { %s448_s0 = sadd.s32 4294967295, %s405_s14   ;;  %s253_s15 = sadd.s32 4294967294, %s405_s14   ;;  %s405_s14 = sphi %s433_s14, %s587_s14   ;;  %s401_s13 = sphi %s431_s13, %s586_s13   ;;  %s397_s12 = sphi %s429_s12, %s585_s12   ;;  %s393_s11 = sphi %s427_s11, %s584_s11  }
   0x8   : > { %s452_s16 = sadd.s32 1, %s405_s14   ;;  %s47_s17 = sadd.s32 1, %s401_s13 }
   0x9   : > { %s44_s18 = ssub.s32 %s405_s14, %s452_s16  ;;  %p54_p0 = scmp.ne.s32.totalorder %s401_s13, %s397_s12 }
   0xa   : > { %p45_p1 = scmp.eq.s32.totalorder %s44_s18, 0  ;;  %p55_p2 = scmp.eq.s32.totalorder %s405_s14, 0 }
   0xb   : > { %p60_p3 = scmp.ne.s32.totalorder %s397_s12, %s393_s11  ;;  %p61_p4 = scmp.eq.s32.totalorder %s448_s0, 0 }
   0xc   : > { %s464_s19 = scalar_select %p45_p1, %s401_s13, %s47_s17  }
   0xd   : > { %p466_p5 = por %p55_p2, %p54_p0  ;;  %p470_p6 = por %p61_p4, %p60_p3 }
   0xe   : > { %p84_p7 = scmp.eq.s32.totalorder %s448_s0, 1  ;;  %p90_p8 = scmp.eq.s32.totalorder %s253_s15, 1 }
   0xf   : > { %s574_s21 = scalar_select %p470_p6, 1, 0 }
  0x10   : > { %p277_p10 = scmp.lt.s32.totalorder %s405_s14, 2  ;;  %p477_p11 = por %p84_p7, %p54_p0 }
  0x11   : > { %p481_p12 = por %p90_p8, %p60_p3  ;;  %s113_s24 = sand.u32 1, %s401_s13  }
  0x12   : > { %s575_s22 = scalar_select %p477_p11, 1, 0 }
  0x13   : > { %s576_s23 = scalar_select %p481_p12, 1, 0 }
  0x14   : > { %s257_s25 = sshll.u32 %s405_s14, 7  ;;  %s256_s26 = sshll.u32 %s113_s24, 3 }
  0x15   : > { %s490_s29 = scalar_lea.hbm %s569_s1, %s257_s25  ;;  %s117_s30 = scalar_lea.vmem [#allocation3], %s256_s26 }
  0x16   : > { %s124_s3 = sshll.u32 %s117_s30, 4  ;;  %p494_p13 = pnand %p277_p10, %p466_p5  ;;  %s498_s3 = int_to_ptr.vmem [resolvable:$true] %s124_s3 }
  0x17   : > { %s114_s5 = scalar_lea.sflag [#allocation4], %s113_s24  ;;  %s313_s6 = scalar_lea.hbm %s490_s29, 128 }
  0x18   : > { %p314_p2 = scmp.ne.s32.totalorder %s490_s29, %s313_s6  ;;  %p315_p3 = pneg %p494_p13 }
  0x19   : > { %s318_s9 = scalar_lea.hbm %s569_s1, 256  ;;  %p319_p5 = scmp.lt.s32.totalorder %s490_s29, %s569_s1 }
  0x1a   : > { %p316_p4 = pnand %p315_p3, %p314_p2  ;;  %p320_p8 = scmp.lt.s32.totalorder %s318_s9, %s313_s6 }
  0x1c   : > { %p317_p7 = pneg %p316_p4  ;;  %p321_p10 = por %p320_p8, %p319_p5 }
  0x1e   : > { %p322_p9 = pnand %p321_p10, %p317_p7 }
  0x20   : > { %325 = shalt.err (!%p322_p9)
}
  0x21   : > { %s326_s17 = scalar_lea.vmem %s498_s3, 128  ;;  %s407_s18 = smov [#allocation3]  }
  0x22   : > { %p327_p0 = scmp.ne.s32.totalorder %s498_s3, %s326_s17  ;;  %s331_s20 = sshll.u32 %s407_s18, 4  ;;  %s332_s20 = int_to_ptr.vmem [resolvable:$false] %s331_s20 }
  0x23   : > { %s333_s24 = scalar_lea.vmem %s332_s20, 256  ;;  %p334_p4 = scmp.lt.s32.totalorder %s498_s3, %s332_s20 }
  0x24   : > { %p329_p1 = pnand %p327_p0, %p315_p3  ;;  %p335_p12 = scmp.lt.s32.totalorder %s333_s24, %s326_s17 }
  0x26   : > { %p330_p2 = pneg %p329_p1  ;;  %p336_p11 = por %p335_p12, %p334_p4 }
  0x28   : > { %p337_p6 = pnand %p336_p11, %p330_p2 }
  0x2a   : > { %340 = shalt.err (!%p337_p6)
}
  0x2b   : > { %272 = dma.hbm_to_vmem [thread:$0]  (!%p494_p13), %s490_s29, 128, %s498_s3, %s114_s5  }
  0x2c   : > { %p578_p9 = scmp.lt.s32.totalorder %s405_s14, 3  ;;  %p579_p7 = scmp.ge.s32.totalorder %s405_s14, 1 }
  0x2e   : > { %p130_p0 = pnand %p579_p7, %p578_p9 }
  0x2f   : > { %s525_s25 = sand.u32 (!%p130_p0), 1, %s397_s12   ;;  %p580_p6 = scmp.ne.s32.totalorder (!%p130_p0), %s574_s21, 0 }
  0x30   : > { %133 = sbr.rel (%p130_p0) target bundleno = 94 (0x5e), region = 28  ;;  %s259_s26 = sshll.u32 (!%p130_p0), %s525_s25, 3 }
  0x31   : > { %s136_s27 = scalar_lea.sflag (!%p130_p0), [#allocation4], %s525_s25  ;;  %s139_s28 = scalar_lea.vmem (!%p130_p0), [#allocation3], %s259_s26 }
  0x35   : > { %384 = dma.done.wait (%p580_p6), %s136_s27, 128  }
  0x36   : > { %386 = vsyncadd (%p580_p6), %s136_s27, 4294967168  ;;  %s161_s29 = sld [smem:[#allocation2]]  ;;  %v160_v0 = vld [vmem:[%s139_s28] sm:$0xff]  ;;  %s159_s30 = scalar_lea.vmem [#allocation6], %s259_s26 }
  0x37   : > { %v162_v2 = vmul.f32 5.0, %v160_v0  ;;  %s183_s3 = sshll.u32 %s159_s30, 4  ;;  %s262_s4 = sshll.u32 %s448_s0, 7  ;;  %s184_s3 = int_to_ptr.vmem [resolvable:$true] %s183_s3 }
  0x38   : > { %s181_s21 = scalar_lea.hbm %s570_s2, %s262_s4  ;;  %s170_s7 = scalar_lea.sflag [#allocation5], %s525_s25 }
  0x39   : > { %s341_s8 = scalar_lea.vmem %s184_s3, 128  ;;  %p581_p12 = scmp.ne.s32.totalorder %s575_s22, 0 }
  0x3a   : > { %p342_p11 = scmp.ne.s32.totalorder %s184_s3, %s341_s8  ;;  %s408_s9 = smov [#allocation6]  }
  0x3b   : > { %s345_s10 = sshll.u32 %s408_s9, 4  ;;  %s346_s10 = int_to_ptr.vmem [resolvable:$false] %s345_s10 }
  0x3c   : > { %v163_v1 = vstv %s161_s29  ;;  %p343_p13 = pnand %p342_p11, %p581_p12  ;;  %s347_s15 = scalar_lea.vmem %s346_s10, 256 }
  0x3d   : > { %v164_v3 = vsub.f32 %v163_v1, %v162_v2  ;;  %p348_p3 = scmp.lt.s32.totalorder %s184_s3, %s346_s10  ;;  %p349_p5 = scmp.lt.s32.totalorder %s347_s15, %s341_s8 }
  0x3e   : > { %p344_p1 = pneg %p343_p13 }
  0x3f   : > { %311 = vtanh.f32 %v164_v3  ;;  %p350_p8 = por %p349_p5, %p348_p3 }
  0x41   : > { %p351_p10 = pnand %p350_p8, %p344_p1 }
  0x4c   : > { %v312_v4 = vpop.eup %311 }
  0x4d   : > { %v166_v5 = vmul.f32 0.5, %v312_v4 }
  0x4f   : > { %v167_v6 = vadd.f32 0.5, %v166_v5 }
  0x51   : > { %168 = vst [vmem:[%s159_s30] sm:$0xff] %v167_v6 }
  0x52   : > { %354 = shalt.err (!%p351_p10)
}
  0x53   : > { %s355_s0 = scalar_lea.hbm %s181_s21, 128  ;;  %s359_s20 = scalar_lea.hbm %s570_s2, 256 }
  0x54   : > { %p356_p2 = scmp.ne.s32.totalorder %s181_s21, %s355_s0  ;;  %p360_p7 = scmp.lt.s32.totalorder %s181_s21, %s570_s2 }
  0x55   : > { %p361_p0 = scmp.lt.s32.totalorder %s359_s20, %s355_s0 }
  0x56   : > { %p357_p4 = pnand %p356_p2, %p581_p12 }
  0x57   : > { %p362_p6 = por %p361_p0, %p360_p7 }
  0x58   : > { %p358_p9 = pneg %p357_p4 }
  0x5a   : > { %p363_p11 = pnand %p362_p6, %p358_p9 }
  0x5c   : > { %366 = shalt.err (!%p363_p11)
}
  0x5d   : > { %267 = dma.vmem_to_hbm [thread:$0]  (%p581_p12), %s184_s3, 128, %s181_s21, %s170_s7  }
  0x5e PF: > { %s195_s26 = sand.u32 1, %s393_s11   ;;  %p582_p13 = scmp.ne.s32.totalorder %s576_s23, 0 }
  0x5f   : > { %p583_p1 = scmp.ge.s32.totalorder %s405_s14, 2  ;;  %s196_s27 = scalar_lea.sflag [#allocation5], %s195_s26 }
  0x61   : > { %p274_p3 = pnand %p583_p1, %p582_p13 }
  0x63   : > { %p275_p5 = pneg %p274_p3 }
  0x65   : > { %388 = dma.done.wait (%p275_p5), %s196_s27, 128  }
  0x66   : > { %390 = vsyncadd (%p275_p5), %s196_s27, 4294967168  ;;  %p16_p8 = scmp.ge.s32.totalorder %s452_s16, 4   ;;  %s584_s11 = smov %s397_s12 }
  0x67   : > { %s585_s12 = smov %s401_s13  ;;  %s586_s13 = smov %s464_s19 }
  0x68   : > { %s587_s14 = smov %s452_s16  ;;  %18 = sbr.rel (!%p16_p8) target bundleno = 7 (0x7), region = 73 }
  0x6d   :  { %201 = vsyncpa [#allocation4], 1 }
  0x6e   :  { %203 = vsyncpa [#allocation4 + $0x1], 1 }
  0x6f   :  { %204 = vsyncpa [#allocation5], 1 }
  0x70   :  { %206 = vsyncpa [#allocation5 + $0x1], 1 }

</bundles_post_ra>
